<compile_context>
chip_gen: v6e
topology: v6e:2x2x1
jax: 0.10.0
libtpu: 0.0.40
codegen_flags: <defaults>
</compile_context>

<pallas_src>
import jax
import jax.numpy as jnp
from jax.experimental import pallas as pl
from jax.experimental.pallas import tpu as pltpu


def _round_up(x, m):
    return ((x + m - 1) // m) * m


def _sublane_multiple(dtype):
    itemsize = jnp.dtype(dtype).itemsize
    if itemsize >= 4:
        return 8
    if itemsize == 2:
        return 16
    return 32


def _make_clip_kernel(w_max, h_max):
    # w_max / h_max are static Python scalars baked into the kernel body.
    def kernel(boxes_ref, out_ref):
        b = boxes_ref[...]                                   # (row_block, LANES)
        lane = jax.lax.broadcasted_iota(jnp.int32, b.shape, b.ndim - 1)
        # Even lanes correspond to x-coords (flat index % 4 in {0, 2}) because
        # LANES is even; odd lanes are y-coords.
        maxv = jnp.where((lane & 1) == 0,
                         jnp.asarray(w_max, b.dtype),
                         jnp.asarray(h_max, b.dtype))
        out_ref[...] = jnp.minimum(jnp.maximum(b, jnp.asarray(0, b.dtype)), maxv)
    return kernel


def _clip_boxes_impl(batch_imgs, batch_boxes):
    """Pallas implementation of ClipBoxes.forward.

    batch_imgs:  [B, C, H, W]  (only shape[2:] is used)
    batch_boxes: [B, N, 4] with last dim = (x1, y1, x2, y2)
    returns:     [B, N, 4] clipped boxes (same dtype as batch_boxes)
    """
    h, w = batch_imgs.shape[2], batch_imgs.shape[3]
    B, N, four = batch_boxes.shape
    assert four == 4
    dtype = batch_boxes.dtype
    itemsize = jnp.dtype(dtype).itemsize
    sublane = _sublane_multiple(dtype)

    T = B * N * 4                        # total elements (always a multiple of 4)

    # Widest lane count (multiple of 128) dividing T -> reshape is a bitcast.
    LANES = None
    for cand in (512, 256, 128):
        if T % cand == 0:
            LANES = cand
            break

    flat = batch_boxes.reshape(-1)
    if LANES is None:
        # Rare fallback: element count not a multiple of 128.  Pad once; padded
        # zeros clamp benignly and are sliced off at the end.
        LANES = 128
        pad_amt = _round_up(T, LANES) - T
        flat = jnp.pad(flat, (0, pad_amt))
    else:
        pad_amt = 0

    rows = flat.shape[0] // LANES
    boxes2d = flat.reshape(rows, LANES)

    # Block sizing: ~4 MiB per buffer, dtype-aware sublane multiple, and keep
    # >= 2 grid steps when possible so the parallel axis can use both v7x TCs.
    # Ragged final blocks are allowed (block dims stay (sublane, 128)-aligned).
    target_rows = max(sublane, (4 * 1024 * 1024) // (LANES * itemsize))
    target_rows = _round_up(target_rows, sublane)
    if rows <= sublane:
        row_block = rows                 # block == full array dim (always legal)
    else:
        half = _round_up(pl.cdiv(rows, 2), sublane)
        row_block = min(target_rows, half)
    n_blocks = pl.cdiv(rows, row_block)

    kernel = _make_clip_kernel(w - 1, h - 1)

    out2d = pl.pallas_call(
        kernel,
        out_shape=jax.ShapeDtypeStruct((rows, LANES), dtype),
        grid=(n_blocks,),
        in_specs=[pl.BlockSpec((row_block, LANES), lambda i: (i, 0))],
        out_specs=pl.BlockSpec((row_block, LANES), lambda i: (i, 0)),
        compiler_params=pltpu.CompilerParams(
            dimension_semantics=("parallel",),
            vmem_limit_bytes=32 * 1024 * 1024,
        ),
    )(boxes2d)

    out_flat = out2d.reshape(-1)
    if pad_amt:
        out_flat = out_flat[:T]
    return out_flat.reshape(B, N, 4)


clip_boxes = jax.jit(_clip_boxes_impl)


def _reference(batch_imgs, batch_boxes):
    h, w = batch_imgs.shape[2], batch_imgs.shape[3]
    ref = jnp.maximum(batch_boxes, 0.0)
    max_vec = jnp.array([w - 1, h - 1, w - 1, h - 1], dtype=batch_boxes.dtype)
    return jnp.minimum(ref, max_vec)


if __name__ == "__main__":
    key = jax.random.PRNGKey(0)
    k_img, k_box1, k_box2 = jax.random.split(key, 3)

    B, C, H, W = 2, 4, 16, 24            # H != W so an x/y swap would be caught
    batch_imgs = jax.random.normal(k_img, (B, C, H, W), dtype=jnp.float32)

    # Main path: B*N*4 divisible by 128 -> zero-copy reshapes.
    N1 = 16
    boxes1 = jax.random.uniform(k_box1, (B, N1, 4), dtype=jnp.float32,
                                minval=-10.0, maxval=40.0)
    out1 = jax.block_until_ready(clip_boxes(batch_imgs, boxes1))
    ref1 = _reference(batch_imgs, boxes1)
    assert out1.shape == boxes1.shape and out1.dtype == boxes1.dtype
    assert jnp.allclose(out1, ref1), "mismatch vs reference (aligned path)"

    # Fallback path: element count not a multiple of 128 (pad + slice).
    N2 = 7
    boxes2 = jax.random.uniform(k_box2, (B, N2, 4), dtype=jnp.float32,
                                minval=-10.0, maxval=40.0)
    out2 = jax.block_until_ready(clip_boxes(batch_imgs, boxes2))
    ref2 = _reference(batch_imgs, boxes2)
    assert out2.shape == boxes2.shape and out2.dtype == boxes2.dtype
    assert jnp.allclose(out2, ref2), "mismatch vs reference (padded path)"

    print("KERNEL_OK")
</pallas_src>

<mosaic_0001>
module attributes {stable_mosaic.version = 11 : i64} {
  func.func @kernel(%arg0: i32, %arg1: memref<1x128xf32, #tpu.memory_space<vmem>>, %arg2: memref<1x128xf32, #tpu.memory_space<vmem>>) attributes {dimension_semantics = [#tpu.dimension_semantics<parallel>], iteration_bounds = array<i64: 1>, scalar_prefetch = 0 : i64, scratch_operands = 0 : i64, tpu.core_type = #tpu.core_type<tc>, window_params = [{transform_indices = @transform_0, window_bounds = array<i64: 1, 128>}, {transform_indices = @transform_1, window_bounds = array<i64: 1, 128>}]} {
    %c0 = arith.constant 0 : index
    %c0_0 = arith.constant 0 : index
    %0 = vector.load %arg1[%c0, %c0_0] : memref<1x128xf32, #tpu.memory_space<vmem>>, vector<1x128xf32>
    %1 = tpu.iota {dimensions = array<i32: 1>} : vector<1x128xi32>
    %c1_i32 = arith.constant 1 : i32
    %2 = vector.broadcast %c1_i32 : i32 to vector<1x128xi32>
    %3 = arith.andi %1, %2 : vector<1x128xi32>
    %c0_i32 = arith.constant 0 : i32
    %4 = vector.broadcast %c0_i32 : i32 to vector<1x128xi32>
    %5 = arith.cmpi eq, %3, %4 : vector<1x128xi32>
    %cst = arith.constant 2.300000e+01 : f32
    %cst_1 = arith.constant 1.500000e+01 : f32
    %6 = vector.broadcast %cst : f32 to vector<1x128xf32>
    %7 = vector.broadcast %cst_1 : f32 to vector<1x128xf32>
    %8 = arith.select %5, %6, %7 : vector<1x128xi1>, vector<1x128xf32>
    %cst_2 = arith.constant 0.000000e+00 : f32
    %9 = vector.broadcast %cst_2 : f32 to vector<1x128xf32>
    %10 = arith.maximumf %0, %9 : vector<1x128xf32>
    %11 = arith.minimumf %10, %8 : vector<1x128xf32>
    %c0_3 = arith.constant 0 : index
    %c0_4 = arith.constant 0 : index
    %12 = vector.load %arg2[%c0_3, %c0_4] : memref<1x128xf32, #tpu.memory_space<vmem>>, vector<1x128xf32>
    tpu.vector_store %arg2[%c0_3, %c0_4], %11 {strides = array<i32>} : memref<1x128xf32, #tpu.memory_space<vmem>>, vector<1x128xf32>,
    return
  }
  func.func @transform_0(%arg0: i32) -> (i32, i32) {
    %c0_i32 = arith.constant 0 : i32
    %c0_i32_0 = arith.constant 0 : i32
    return %arg0, %c0_i32 : i32, i32
  }
  func.func @transform_1(%arg0: i32) -> (i32, i32) {
    %c0_i32 = arith.constant 0 : i32
    %c0_i32_0 = arith.constant 0 : i32
    return %arg0, %c0_i32 : i32, i32
  }
}

</mosaic_0001>

<bundles_post_ra>
// kernel: _clip_boxes_impl.1
= control target key start
LH: loop header
LB: loop body
LE: loop exit
PB: predicated region body
PF: predicated region fallthrough
CT: control target
= control target key end

     0   :  { %v9_v0 = vlaneseq  ;;  %v22_v5 = vmov 15.0   ;;  %s39_s0 = inlined_call_operand.vmem [shape: f32[1,128], index: 0, kind: input, shape index: {}]   ;;  %s40_s1 = inlined_call_operand.vmem [shape: f32[1,128], index: 1, kind: output, shape index: {}]  }
   0x1   :  { %v8_v1 = vld [vmem:[%s39_s0] sm:$0x1] }
   0x2   :  { %v10_v2 = vand.u32 127, %v9_v0  ;;  %v14_v4 = vmax.f32 %v8_v1, 0.0 }
   0x4   :  { %v11_v3 = vand.u32 1, %v10_v2 }
   0x6   :  { %vm12_vm0 = vcmp.eq.s32.totalorder %v11_v3, 0 }
   0x7   :  { %v13_v6 = vsel %vm12_vm0, 23.0, %v22_v5 }
   0x8   :  { %v15_v7 = vmin.f32 %v14_v4, %v13_v6 }
   0xa   :  { %16 = vst [vmem:[%s40_s1] sm:$0x1] %v15_v7 }

</bundles_post_ra>
